<compile_context>
chip_gen: v7x
topology: tpu7x:2x2x1
jax: 0.10.0
libtpu: 0.0.40
codegen_flags: <defaults>
</compile_context>

<pallas_src>
import jax
import jax.numpy as jnp
from jax.experimental import pallas as pl
from jax.experimental.pallas import tpu as pltpu

BN_EPS = 1e-5
LEAKY_SLOPE = 0.01            # PyTorch nn.LeakyReLU default negative_slope
_L1_TILE_B = 512              # batch tile for the pipelined layer-1 sweep
_VMEM_LIMIT = 32 * 1024 * 1024  # explicit scoped-VMEM limit (safe on v5e/v6e/v7x)


def _leaky_relu(x):
    # max(x, a*x) == LeakyReLU(x) for 0 < a < 1: single VALU op per vreg.
    return jnp.maximum(x, LEAKY_SLOPE * x)


# --------------------------------------------------------------------------------
# Kernel 1: Linear(784 -> 1), batch-tiled + pipelined (mem-bound HBM sweep over x).
# --------------------------------------------------------------------------------
def _layer1_kernel(x_ref, w1_ref, h1_ref):
    # w1 is lane-dense (1, 784): VPU multiply + XLU lane reduce (no N=1 MXU matmul).
    # b1 omitted: cancelled exactly by the training-mode BN mean subtraction.
    h1_ref[...] = jnp.sum(x_ref[...] * w1_ref[...], axis=-1, keepdims=True)


def _layer1(x_flat, w1):
    B, D = x_flat.shape
    tile_b = B if B <= _L1_TILE_B else _L1_TILE_B
    n_tiles = pl.cdiv(B, tile_b)
    Bp = n_tiles * tile_b
    if Bp != B:
        # Zero-pad the batch for tiling; padded rows are sliced off before the BN
        # epilogue so they never contaminate the batch statistics.
        x_flat = jnp.pad(x_flat, ((0, Bp - B), (0, 0)))

    h1 = pl.pallas_call(
        _layer1_kernel,
        out_shape=jax.ShapeDtypeStruct((Bp, 1), jnp.float32),
        grid_spec=pltpu.PrefetchScalarGridSpec(
            num_scalar_prefetch=0,
            grid=(n_tiles,),
            in_specs=[pl.BlockSpec((tile_b, D), lambda i: (i, 0)),
                      pl.BlockSpec((1, D), lambda i: (0, 0))],
            out_specs=pl.BlockSpec((tile_b, 1), lambda i: (i, 0)),
        ),
        compiler_params=pltpu.CompilerParams(
            dimension_semantics=("parallel",),   # megacore-shardable batch axis
            vmem_limit_bytes=_VMEM_LIMIT),
    )(x_flat, w1)
    return h1[:B]


# --------------------------------------------------------------------------------
# Kernel 2: BN1 -> LeakyReLU -> Linear(1->16) -> BN2 -> LeakyReLU -> Linear(16->10)
# Single-block epilogue over the tiny (B, 1) h1.
# --------------------------------------------------------------------------------
def _epilogue_kernel(h1_ref, pk_ref, w3t_ref, bn1_ref, o_ref):
    h1 = h1_ref[...]                                               # (B, 1)

    # ---- BatchNorm1d(1), training-mode batch stats folded to scale/shift.
    mean1 = jnp.mean(h1, axis=0, keepdims=True)                    # (1, 1)
    var1 = jnp.mean((h1 - mean1) ** 2, axis=0, keepdims=True)
    scale1 = bn1_ref[0] * jax.lax.rsqrt(var1 + BN_EPS)             # gamma1 (SMEM scalar)
    shift1 = bn1_ref[1] - mean1 * scale1                           # beta1  (SMEM scalar)
    a1 = _leaky_relu(h1 * scale1 + shift1)                         # (B, 1)

    # Packed small params: rows = [w2_row, gamma2, beta2, b3_padded], each (1, 16).
    w2_row = pk_ref[0:1, :]
    g2 = pk_ref[1:2, :]
    be2 = pk_ref[2:3, :]
    b3_pad = pk_ref[3:4, :]

    # ---- Linear(1 -> 16): broadcast outer product on the VPU (b2 cancels under BN).
    h2 = a1 * w2_row                                               # (B, 16)

    # ---- BatchNorm1d(16) folded to scale/shift.
    mean2 = jnp.mean(h2, axis=0, keepdims=True)                    # (1, 16)
    var2 = jnp.mean((h2 - mean2) ** 2, axis=0, keepdims=True)
    scale2 = g2 * jax.lax.rsqrt(var2 + BN_EPS)
    shift2 = be2 - mean2 * scale2
    a2 = _leaky_relu(h2 * scale2 + shift2)                         # (B, 16)

    # ---- Linear(16 -> 10): one MXU contraction against the zero-padded (16, 16)
    # transposed weight.  Padded output columns stay exactly 0 and are sliced off
    # in the wrapper; the store here is a 16-wide slab, not a 10-wide masked store.
    out = jax.lax.dot_general(
        a2, w3t_ref[...],
        dimension_numbers=(((1,), (1,)), ((), ())),
        preferred_element_type=jnp.float32) + b3_pad               # (B, 16)
    o_ref[...] = out.astype(o_ref.dtype)


# --------------------------------------------------------------------------------
# Wrapper (jitted: reshape + both pallas_calls + final slice in one program).
# --------------------------------------------------------------------------------
@jax.jit
def model_4_forward(x_nchw, params):
    B = x_nchw.shape[0]
    assert B >= 2, "training-mode BatchNorm1d requires batch size > 1"
    # NCHW -> (B, 784): row-major, matches PyTorch x.view(B, -1).  Done in HBM
    # (free bitcast); never reshaped inside a kernel (would force a VMEM relayout).
    x_flat = x_nchw.reshape(B, -1).astype(jnp.float32)

    h1 = _layer1(x_flat, params["w1"])                             # (B, 1)

    vmem = pl.BlockSpec(memory_space=pltpu.MemorySpace.VMEM)
    smem = pl.BlockSpec(memory_space=pltpu.MemorySpace.SMEM)
    out16 = pl.pallas_call(
        _epilogue_kernel,
        out_shape=jax.ShapeDtypeStruct((B, 16), jnp.float32),
        in_specs=[vmem, vmem, vmem, smem],
        out_specs=vmem,
        compiler_params=pltpu.CompilerParams(vmem_limit_bytes=_VMEM_LIMIT),
    )(h1, params["packed"], params["w3t_pad"], params["bn1"])
    return out16[:, :10]


# --------------------------------------------------------------------------------
# Parameter construction (PyTorch-default-style init) + pure-JAX reference.
# --------------------------------------------------------------------------------
def init_params(key):
    k1, k2, k3, k4 = jax.random.split(key, 4)

    def linear(k, fan_in, fan_out):
        bound = 1.0 / jnp.sqrt(jnp.float32(fan_in))
        kw, kb = jax.random.split(k)
        w = jax.random.uniform(kw, (fan_out, fan_in), jnp.float32, -bound, bound)
        b = jax.random.uniform(kb, (1, fan_out), jnp.float32, -bound, bound)
        return w, b

    w1, b1 = linear(k1, 28 * 28, 1)      # (1, 784), (1, 1)
    w2, b2 = linear(k2, 1, 16)           # (16, 1),  (1, 16)
    w3, b3 = linear(k3, 16, 10)          # (10, 16), (1, 10)

    # PyTorch BN init is gamma=1, beta=0; perturb slightly so the equivalence check
    # actually exercises the folded scale/shift path.
    kg1, kb1, kg2, kb2 = jax.random.split(k4, 4)
    g1 = 1.0 + 0.1 * jax.random.normal(kg1, (1, 1), jnp.float32)
    be1 = 0.1 * jax.random.normal(kb1, (1, 1), jnp.float32)
    g2 = 1.0 + 0.1 * jax.random.normal(kg2, (1, 16), jnp.float32)
    be2 = 0.1 * jax.random.normal(kb2, (1, 16), jnp.float32)

    # Kernel-side packed forms (fewer tiny VMEM/SMEM DMAs per call).
    w2_row = w2.T                                                  # (1, 16)
    b3_pad = jnp.pad(b3, ((0, 0), (0, 6)))                         # (1, 16)
    packed = jnp.concatenate([w2_row, g2, be2, b3_pad], axis=0)    # (4, 16)
    w3t_pad = jnp.pad(w3, ((0, 6), (0, 0)))                        # (16, 16), zero rows
    bn1 = jnp.array([g1[0, 0], be1[0, 0]], jnp.float32)            # (2,) SMEM scalars

    return {
        # kernel inputs
        "w1": w1, "bn1": bn1, "packed": packed, "w3t_pad": w3t_pad,
        # full parameter set, kept for the pure-JAX reference check
        # (b1/b2 are dead inside the kernels under training-mode BN).
        "b1": b1, "g1": g1, "be1": be1,
        "w2": w2, "b2": b2, "g2": g2, "be2": be2,
        "w3": w3, "b3": b3,
    }


def reference_forward(x_nchw, p):
    # Faithful translation of the PyTorch forward (training mode), incl. b1/b2.
    def bn(h, gamma, beta):
        mean = jnp.mean(h, axis=0, keepdims=True)
        var = jnp.mean((h - mean) ** 2, axis=0, keepdims=True)
        return (h - mean) * jax.lax.rsqrt(var + BN_EPS) * gamma + beta

    def lrelu(h):
        return jnp.where(h >= 0, h, LEAKY_SLOPE * h)

    x = x_nchw.reshape(x_nchw.shape[0], -1).astype(jnp.float32)
    h = x @ p["w1"].T + p["b1"]
    h = lrelu(bn(h, p["g1"], p["be1"]))
    h = h @ p["w2"].T + p["b2"]
    h = lrelu(bn(h, p["g2"], p["be2"]))
    return h @ p["w3"].T + p["b3"]


# TODO(synk): eval-mode BatchNorm (running_mean/running_var + pre-BN biases) is not
# implemented; this kernel matches the module's training-mode forward only.

if __name__ == "__main__":
    key = jax.random.PRNGKey(0)
    kx, kp = jax.random.split(key)

    B = 8  # training-mode BatchNorm1d needs batch > 1
    x = jax.random.normal(kx, (B, 1, 28, 28), jnp.float32)   # NCHW, MNIST-sized
    params = init_params(kp)

    out = jax.block_until_ready(model_4_forward(x, params))
    ref = reference_forward(x, params)

    assert out.shape == (B, 10)
    assert jnp.allclose(out, ref, atol=1e-4, rtol=1e-4), float(jnp.max(jnp.abs(out - ref)))

    print("KERNEL_OK")
</pallas_src>

<mosaic_0001>
module attributes {stable_mosaic.version = 11 : i64} {
  func.func @_epilogue_kernel(%arg0: memref<8x1xf32, #tpu.memory_space<vmem>>, %arg1: memref<4x16xf32, #tpu.memory_space<vmem>>, %arg2: memref<16x16xf32, #tpu.memory_space<vmem>>, %arg3: memref<2xf32, #tpu.memory_space<smem>>, %arg4: memref<8x16xf32, #tpu.memory_space<vmem>>) attributes {dimension_semantics = [], scalar_prefetch = 0 : i64, scratch_operands = 0 : i64, tpu.core_type = #tpu.core_type<tc>} {
    %c0 = arith.constant 0 : index
    %c0_0 = arith.constant 0 : index
    %0 = vector.load %arg0[%c0, %c0_0] : memref<8x1xf32, #tpu.memory_space<vmem>>, vector<8x1xf32>
    %cst = arith.constant dense<0.000000e+00> : vector<1xf32>
    %1 = vector.multi_reduction <add>, %0, %cst [0] : vector<8x1xf32> to vector<1xf32>
    %2 = vector.shape_cast %1 : vector<1xf32> to vector<1x1xf32>
    %cst_1 = arith.constant 8.000000e+00 : f32
    %3 = vector.broadcast %cst_1 : f32 to vector<1x1xf32>
    %4 = arith.divf %2, %3 : vector<1x1xf32>
    %5 = vector.broadcast %4 : vector<1x1xf32> to vector<8x1xf32>
    %6 = arith.subf %0, %5 : vector<8x1xf32>
    %7 = arith.mulf %6, %6 : vector<8x1xf32>
    %cst_2 = arith.constant dense<0.000000e+00> : vector<1xf32>
    %8 = vector.multi_reduction <add>, %7, %cst_2 [0] : vector<8x1xf32> to vector<1xf32>
    %9 = vector.shape_cast %8 : vector<1xf32> to vector<1x1xf32>
    %cst_3 = arith.constant 8.000000e+00 : f32
    %10 = vector.broadcast %cst_3 : f32 to vector<1x1xf32>
    %11 = arith.divf %9, %10 : vector<1x1xf32>
    %c0_4 = arith.constant 0 : index
    %12 = memref.load %arg3[%c0_4] : memref<2xf32, #tpu.memory_space<smem>>
    %cst_5 = arith.constant 9.99999974E-6 : f32
    %13 = vector.broadcast %cst_5 : f32 to vector<1x1xf32>
    %14 = arith.addf %11, %13 : vector<1x1xf32>
    %15 = math.rsqrt %14 : vector<1x1xf32>
    %16 = vector.broadcast %12 : f32 to vector<1x1xf32>
    %17 = arith.mulf %16, %15 : vector<1x1xf32>
    %c1 = arith.constant 1 : index
    %18 = memref.load %arg3[%c1] : memref<2xf32, #tpu.memory_space<smem>>
    %19 = arith.mulf %4, %17 : vector<1x1xf32>
    %20 = vector.broadcast %18 : f32 to vector<1x1xf32>
    %21 = arith.subf %20, %19 : vector<1x1xf32>
    %22 = vector.broadcast %17 : vector<1x1xf32> to vector<8x1xf32>
    %23 = arith.mulf %0, %22 : vector<8x1xf32>
    %24 = vector.broadcast %21 : vector<1x1xf32> to vector<8x1xf32>
    %25 = arith.addf %23, %24 : vector<8x1xf32>
    %cst_6 = arith.constant 0.00999999977 : f32
    %26 = vector.broadcast %cst_6 : f32 to vector<8x1xf32>
    %27 = arith.mulf %26, %25 : vector<8x1xf32>
    %28 = arith.maximumf %25, %27 : vector<8x1xf32>
    %c0_7 = arith.constant 0 : index
    %c0_8 = arith.constant 0 : index
    %29 = vector.load %arg1[%c0_7, %c0_8] : memref<4x16xf32, #tpu.memory_space<vmem>>, vector<1x16xf32>
    %c1_9 = arith.constant 1 : index
    %c0_10 = arith.constant 0 : index
    %30 = vector.load %arg1[%c1_9, %c0_10] : memref<4x16xf32, #tpu.memory_space<vmem>>, vector<1x16xf32>
    %c2 = arith.constant 2 : index
    %c0_11 = arith.constant 0 : index
    %31 = vector.load %arg1[%c2, %c0_11] : memref<4x16xf32, #tpu.memory_space<vmem>>, vector<1x16xf32>
    %c3 = arith.constant 3 : index
    %c0_12 = arith.constant 0 : index
    %32 = vector.load %arg1[%c3, %c0_12] : memref<4x16xf32, #tpu.memory_space<vmem>>, vector<1x16xf32>
    %33 = vector.broadcast %28 : vector<8x1xf32> to vector<8x16xf32>
    %34 = vector.broadcast %29 : vector<1x16xf32> to vector<8x16xf32>
    %35 = arith.mulf %33, %34 : vector<8x16xf32>
    %cst_13 = arith.constant dense<0.000000e+00> : vector<16xf32>
    %36 = vector.multi_reduction <add>, %35, %cst_13 [0] : vector<8x16xf32> to vector<16xf32>
    %37 = vector.shape_cast %36 : vector<16xf32> to vector<1x16xf32>
    %cst_14 = arith.constant 8.000000e+00 : f32
    %38 = vector.broadcast %cst_14 : f32 to vector<1x16xf32>
    %39 = arith.divf %37, %38 : vector<1x16xf32>
    %40 = vector.broadcast %39 : vector<1x16xf32> to vector<8x16xf32>
    %41 = arith.subf %35, %40 : vector<8x16xf32>
    %42 = arith.mulf %41, %41 : vector<8x16xf32>
    %cst_15 = arith.constant dense<0.000000e+00> : vector<16xf32>
    %43 = vector.multi_reduction <add>, %42, %cst_15 [0] : vector<8x16xf32> to vector<16xf32>
    %44 = vector.shape_cast %43 : vector<16xf32> to vector<1x16xf32>
    %cst_16 = arith.constant 8.000000e+00 : f32
    %45 = vector.broadcast %cst_16 : f32 to vector<1x16xf32>
    %46 = arith.divf %44, %45 : vector<1x16xf32>
    %cst_17 = arith.constant 9.99999974E-6 : f32
    %47 = vector.broadcast %cst_17 : f32 to vector<1x16xf32>
    %48 = arith.addf %46, %47 : vector<1x16xf32>
    %49 = math.rsqrt %48 : vector<1x16xf32>
    %50 = arith.mulf %30, %49 : vector<1x16xf32>
    %51 = arith.mulf %39, %50 : vector<1x16xf32>
    %52 = arith.subf %31, %51 : vector<1x16xf32>
    %53 = vector.broadcast %50 : vector<1x16xf32> to vector<8x16xf32>
    %54 = arith.mulf %35, %53 : vector<8x16xf32>
    %55 = vector.broadcast %52 : vector<1x16xf32> to vector<8x16xf32>
    %56 = arith.addf %54, %55 : vector<8x16xf32>
    %cst_18 = arith.constant 0.00999999977 : f32
    %57 = vector.broadcast %cst_18 : f32 to vector<8x16xf32>
    %58 = arith.mulf %57, %56 : vector<8x16xf32>
    %59 = arith.maximumf %56, %58 : vector<8x16xf32>
    %c0_19 = arith.constant 0 : index
    %c0_20 = arith.constant 0 : index
    %60 = vector.load %arg2[%c0_19, %c0_20] : memref<16x16xf32, #tpu.memory_space<vmem>>, vector<16x16xf32>
    %cst_21 = arith.constant dense<0.000000e+00> : vector<8x16xf32>
    %61 = tpu.matmul %59, %60, %cst_21 {dimension_numbers = #tpu.dot_dimension_numbers<[1], [1], [0], [0], [0, 0, 1, 0], [], []>} : vector<8x16xf32>, vector<16x16xf32>, vector<8x16xf32> -> vector<8x16xf32>
    %62 = vector.broadcast %32 : vector<1x16xf32> to vector<8x16xf32>
    %63 = arith.addf %61, %62 : vector<8x16xf32>
    %c0_22 = arith.constant 0 : index
    %c0_23 = arith.constant 0 : index
    %64 = vector.load %arg4[%c0_22, %c0_23] : memref<8x16xf32, #tpu.memory_space<vmem>>, vector<8x16xf32>
    tpu.vector_store %arg4[%c0_22, %c0_23], %63 {strides = array<i32>} : memref<8x16xf32, #tpu.memory_space<vmem>>, vector<8x16xf32>,
    return
  }
}

module attributes {stable_mosaic.version = 11 : i64} {
  func.func @_layer1_kernel(%arg0: i32, %arg1: memref<8x784xf32, #tpu.memory_space<vmem>>, %arg2: memref<1x784xf32, #tpu.memory_space<vmem>>, %arg3: memref<8x1xf32, #tpu.memory_space<vmem>>) attributes {dimension_semantics = [#tpu.dimension_semantics<parallel>], iteration_bounds = array<i64: 1>, scalar_prefetch = 0 : i64, scratch_operands = 0 : i64, tpu.core_type = #tpu.core_type<tc>, window_params = [{transform_indices = @transform_0, window_bounds = array<i64: 8, 784>}, {pipeline_mode = #tpu.pipeline_mode<synchronous>, transform_indices = @transform_1, window_bounds = array<i64: 1, 784>}, {transform_indices = @transform_2, window_bounds = array<i64: 8, 1>}]} {
    %c0 = arith.constant 0 : index
    %c0_0 = arith.constant 0 : index
    %0 = vector.load %arg1[%c0, %c0_0] : memref<8x784xf32, #tpu.memory_space<vmem>>, vector<8x784xf32>
    %c0_1 = arith.constant 0 : index
    %c0_2 = arith.constant 0 : index
    %1 = vector.load %arg2[%c0_1, %c0_2] : memref<1x784xf32, #tpu.memory_space<vmem>>, vector<1x784xf32>
    %2 = vector.broadcast %1 : vector<1x784xf32> to vector<8x784xf32>
    %3 = arith.mulf %0, %2 : vector<8x784xf32>
    %cst = arith.constant dense<0.000000e+00> : vector<8xf32>
    %4 = vector.multi_reduction <add>, %3, %cst [1] : vector<8x784xf32> to vector<8xf32>
    %5 = vector.shape_cast %4 : vector<8xf32> to vector<8x1xf32>
    %c0_3 = arith.constant 0 : index
    %c0_4 = arith.constant 0 : index
    %6 = vector.load %arg3[%c0_3, %c0_4] : memref<8x1xf32, #tpu.memory_space<vmem>>, vector<8x1xf32>
    tpu.vector_store %arg3[%c0_3, %c0_4], %5 {strides = array<i32>} : memref<8x1xf32, #tpu.memory_space<vmem>>, vector<8x1xf32>,
    return
  }
  func.func @transform_0(%arg0: i32) -> (i32, i32) {
    %c0_i32 = arith.constant 0 : i32
    %c0_i32_0 = arith.constant 0 : i32
    return %arg0, %c0_i32 : i32, i32
  }
  func.func @transform_1(%arg0: i32) -> (i32, i32) {
    %c0_i32 = arith.constant 0 : i32
    %c0_i32_0 = arith.constant 0 : i32
    %c0_i32_1 = arith.constant 0 : i32
    return %c0_i32, %c0_i32_0 : i32, i32
  }
  func.func @transform_2(%arg0: i32) -> (i32, i32) {
    %c0_i32 = arith.constant 0 : i32
    %c0_i32_0 = arith.constant 0 : i32
    return %arg0, %c0_i32 : i32, i32
  }
}

</mosaic_0001>

<bundles_post_ra>
// kernel: model_4_forward.2
= control target key start
LH: loop header
LB: loop body
LE: loop exit
PB: predicated region body
PF: predicated region fallthrough
CT: control target
= control target key end

     0   :  { %v20_v0 = vlaneseq  ;;  %vm67_vm0 = vcmask 130048   ;;  %vm72_vm1 = vcmask 7168   ;;  %s120_s1 = inlined_call_operand.vmem [shape: f32[1,784], index: 1, kind: input, shape index: {}]   ;;  %s121_s0 = inlined_call_operand.vmem [shape: f32[8,784], index: 0, kind: input, shape index: {}]   ;;  %s122_s2 = inlined_call_operand.vmem [shape: f32[8,1], index: 2, kind: output, shape index: {}]  }
   0x1   :  { %v18_v2 = vld [vmem:[%s120_s1] sm:$0x7f]  ;;  %v12_v8 = vld [vmem:[%s121_s0 + $0x8] sm:$0xff]  ;;  %v13_v9 = vld [vmem:[%s121_s0 + $0x10] sm:$0xff] }
   0x2   :  { %v21_v1 = vshrl.u32 %v20_v0, 7  ;;  %v11_v7 = vld [vmem:[%s121_s0] sm:$0xff]  ;;  %v14_v17 = vld [vmem:[%s121_s0 + $0x18] sm:$0xff]  ;;  %v17_v24 = vld [vmem:[%s121_s0 + $0x30] sm:$0xff] }
   0x3   :  { %v15_v22 = vld [vmem:[%s121_s0 + $0x20] sm:$0xff]  ;;  %v16_v28 = vld [vmem:[%s121_s0 + $0x28] sm:$0xff] }
   0x4   :  { %v22_v3 = vsub.s32 0, %v21_v1  ;;  %v26_v4 = vsub.s32 1, %v21_v1  ;;  %v30_v5 = vsub.s32 2, %v21_v1  ;;  %v34_v6 = vsub.s32 3, %v21_v1 }
   0x5   :  { %v38_v10 = vsub.s32 4, %v21_v1  ;;  %v42_v11 = vsub.s32 5, %v21_v1  ;;  %v46_v12 = vsub.s32 6, %v21_v1 }
   0x6   :  { %v23_v13 = vrot.slane %v18_v2, %v22_v3  ;;  %v27_v14 = vrot.slane %v18_v2, %v26_v4  ;;  %v31_v15 = vrot.slane %v18_v2, %v30_v5  ;;  %v35_v16 = vrot.slane %v18_v2, %v34_v6 }
   0x7   :  { %v39_v18 = vrot.slane %v18_v2, %v38_v10  ;;  %v47_v23 = vrot.slane %v18_v2, %v46_v12  ;;  %v43_v25 = vrot.slane %v18_v2, %v42_v11 }
   0x8   :  { %v55_v19 = vmul.f32 %v23_v13, %v11_v7  ;;  %v56_v20 = vmul.f32 %v27_v14, %v12_v8  ;;  %v57_v21 = vmul.f32 %v31_v15, %v13_v9  ;;  %v58_v26 = vmul.f32 %v35_v16, %v14_v17 }
   0x9   :  { %v59_v29 = vmul.f32 %v39_v18, %v15_v22  ;;  %v61_v31 = vmul.f32 %v47_v23, %v17_v24  ;;  %v60_v32 = vmul.f32 %v43_v25, %v16_v28 }
   0xa   :  { %v62_v27 = vadd.f32 %v56_v20, %v55_v19 }
   0xb   :  { %v68_v35 = vsel %vm67_vm0, %v61_v31, 0.0 }
   0xc   :  { %v63_v30 = vadd.f32 %v62_v27, %v57_v21 }
   0xe   :  { %v64_v33 = vadd.f32 %v63_v30, %v58_v26 }
  0x10   :  { %v65_v34 = vadd.f32 %v64_v33, %v59_v29 }
  0x12   :  { %v66_v36 = vadd.f32 %v65_v34, %v60_v32 }
  0x14   :  { %v69_v37 = vadd.f32 %v68_v35, %v66_v36 }
  0x16   :  { %70 = vadd.xlane.f32.xlu0 %v69_v37 }
  0xa3   :  { %v71_v38 = vpop.xlane.xlu0 %70 }
  0xa4   :  { %73 = vst.msk [vmem:[%s122_s2] sm:$0xff] %vm72_vm1, %v71_v38 }

// kernel: model_4_forward.3
= control target key start
LH: loop header
LB: loop body
LE: loop exit
PB: predicated region body
PF: predicated region fallthrough
CT: control target
= control target key end

     0   :  { %9 = vsyncpa [#allocation4], 0  ;;  %s358_s0 = inlined_call_operand.vmem [shape: f32[8,1], index: 0, kind: input, shape index: {}]   ;;  %s359_s1 = inlined_call_operand.vmem [shape: f32[4,16], index: 1, kind: input, shape index: {}]   ;;  %s360_s2 = inlined_call_operand.vmem [shape: f32[16,16], index: 2, kind: input, shape index: {}]   ;;  %s361_s3 = inlined_call_operand.vmem [shape: f32[2], index: 3, kind: input, shape index: {}]   ;;  %s362_s4 = inlined_call_operand.hbm [shape: f32[8,16], index: 4, kind: output, shape index: {}]  }
   0x1   :  { %10 = vsyncpa [#allocation3], 0  ;;  %s23_s17 = sshll.u32 %s361_s3, 4  ;;  %s24_s17 = int_to_ptr.vmem [resolvable:$true] %s23_s17 }
   0x2   :  { %s247_s18 = scalar_lea.vmem %s24_s17, 16  ;;  %p252_p1 = scmp.lt.s32.totalorder %s24_s17, %s24_s17 }
   0x3   :  { %p248_p0 = scmp.ne.s32.totalorder %s24_s17, %s247_s18  ;;  %p253_p2 = scmp.lt.s32.totalorder %s247_s18, %s247_s18 }
   0x5   :  { %p254_p3 = por %p253_p2, %p252_p1 }
   0x7   :  { %p255_p4 = pnand %p254_p3, %p248_p0 }
   0x9   :  { %258 = shalt.err (!%p255_p4)
}
   0xa   :  { %s285_s19 = smov [#allocation2]  }
   0xb   :  { %26 = dma.vmem_to_smem %s24_s17, 16, %s285_s19, [#allocation4]  }
   0xc   :  { %281 = dma.done.wait [#allocation4], 16  }
   0xd   :  { %282 = vsyncadd [#allocation4], 4294967280 }
   0xe   :  { %30 = sfence }
   0xf   :  { %v31_v0 = vld [vmem:[%s358_s0] sm:$0xff]  ;;  %vm32_vm0 = vcmask 7168   ;;  %v286_v1 = vmov 0   ;;  %s52_s0 = sld [smem:[#allocation2]]  ;;  %s216_s3 = sld [smem:[#allocation2 + $0x1]]  ;;  %v116_v32 = vld [vmem:[%s360_s2 + $0x8] sm:$0xff]  ;;  %v103_v58 = vlaneseq }
  0x10   :  { %242 = vset.pattern.permute.xlu0 %v286_v1  ;;  %v33_v2 = vsel %vm32_vm0, %v31_v0, 0.0  ;;  %v115_v31 = vld [vmem:[%s360_s2] sm:$0xff]  ;;  %vm79_vm1 = vcmask 130048   ;;  %v287_v34 = vmov 0.0|0.0   ;;  %vm288_vm3 = vmmov 0   ;;  %s290_s7 = smov [#allocation5]  }
  0x11   :  { %v34_v3 = vrot.slane %v33_v2, 4  ;;  %v233_v33 = vpack.c.bf16 %v116_v32, %v115_v31  ;;  %232 = vmatprep.subr.bf16.mxu0 %v287_v34  ;;  %vm234_vm2 = vmpackc.low %vm79_vm1, %vm79_vm1  ;;  %v289_v35 = vmov 0.0   ;;  %v217_v36 = vld [vmem:[%s359_s1] ss:$0 sm:$0xff]  ;;  %v104_v59 = vshrl.u32 %v103_v58, 7  ;;  %s207_s8 = sshll.u32 %s290_s7, 4  ;;  %s208_s8 = int_to_ptr.vmem [resolvable:$true] %s207_s8 }
  0x12   :  { %229 = vmatprep.mubr.msk.f32.mxu0 %vm288_vm3, %v289_v35  ;;  %v66_v60 = vld [vmem:[%s359_s1 + $0x1] sm:$0x1]  ;;  %s259_s9 = scalar_lea.vmem %s208_s8, 128  ;;  %p264_p6 = scmp.lt.s32.totalorder %s208_s8, %s208_s8 }
  0x13   :  { %v35_v4 = vadd.f32 %v34_v3, %v33_v2  ;;  %235 = vmatpush3.bf16.xpose.msk.msra.mxu0 %vm234_vm2, %v233_v33  ;;  %v105_v61 = vsub.s32 0, %v104_v59  ;;  %p260_p5 = scmp.ne.s32.totalorder %s208_s8, %s259_s9  ;;  %p265_p7 = scmp.lt.s32.totalorder %s259_s9, %s259_s9 }
  0x15   :  { %v36_v5 = vrot.slane %v35_v4, 2  ;;  %v55_v21 = vstv %s52_s0  ;;  %v59_v24 = vstv %s216_s3  ;;  %p266_p8 = por %p265_p7, %p264_p6 }
  0x17   :  { %v37_v6 = vadd.f32 %v36_v5, %v35_v4  ;;  %p267_p9 = pnand %p266_p8, %p260_p5 }
  0x19   :  { %v38_v7 = vrot.slane %v37_v6, 1 }
  0x1b   :  { %v39_v8 = vadd.f32 %v38_v7, %v37_v6 }
  0x1d   :  { %v41_v9 = vmul.f32 0.125, %v39_v8 }
  0x1f   :  { %v42_v10 = vsub.f32 %v31_v0, %v41_v9 }
  0x21   :  { %v43_v11 = vmul.f32 %v42_v10, %v42_v10 }
  0x23   :  { %v44_v12 = vsel %vm32_vm0, %v43_v11, 0.0 }
  0x24   :  { %v45_v13 = vrot.slane %v44_v12, 4 }
  0x26   :  { %v46_v14 = vadd.f32 %v45_v13, %v44_v12 }
  0x28   :  { %v47_v15 = vrot.slane %v46_v14, 2 }
  0x2a   :  { %v48_v16 = vadd.f32 %v47_v15, %v46_v14 }
  0x2c   :  { %v49_v17 = vrot.slane %v48_v16, 1 }
  0x2e   :  { %v50_v18 = vadd.f32 %v49_v17, %v48_v16 }
  0x30   :  { %v51_v19 = vmul.f32 0.125, %v50_v18 }
  0x32   :  { %v53_v20 = vadd.f32 1e-05, %v51_v19 }
  0x34   :  { %243 = vrsqrt.f32 %v53_v20 }
  0x3e   :  { %v244_v22 = vpop.eup %243 }
  0x3f   :  { %v56_v23 = vmul.f32 %v244_v22, %v55_v21 }
  0x41   :  { %v58_v25 = vmul.f32 %v56_v23, %v41_v9  ;;  %v61_v26 = vmul.f32 %v56_v23, %v31_v0  ;;  %v67_v0 = vld [vmem:[%s359_s1 + $0x2] sm:$0x1]  ;;  %v218_v9 = vld [vmem:[%s359_s1 + $0x3] ss:$0 sm:$0xff] }
  0x43   :  { %v60_v27 = vsub.f32 %v59_v24, %v58_v25 }
  0x45   :  { %v62_v28 = vadd.f32 %v61_v26, %v60_v27 }
  0x47   :  { %v63_v29 = vmul.f32 0.01, %v62_v28 }
  0x49   :  { %v64_v30 = vmax.f32 %v62_v28, %v63_v29 }
  0x4b   :  { %71 = vperm.xlu0 %242, %v64_v30  }
  0xca   :  { %v72_v37 = vpop.permute.xlu0 %71 }
  0xcb   :  { %v78_v38 = vmul.f32 %v217_v36, %v72_v37 }
  0xcd   :  { %v80_v39 = vsel %vm79_vm1, %v78_v38, 0.0 }
  0xce   :  { %v81_v40 = vrot.slane %v80_v39, 4 }
  0xd0   :  { %v82_v41 = vadd.f32 %v81_v40, %v80_v39 }
  0xd2   :  { %v83_v42 = vrot.slane %v82_v41, 2 }
  0xd4   :  { %v84_v43 = vadd.f32 %v83_v42, %v82_v41 }
  0xd6   :  { %v85_v44 = vrot.slane %v84_v43, 1 }
  0xd8   :  { %v86_v45 = vadd.f32 %v85_v44, %v84_v43 }
  0xda   :  { %v87_v46 = vmul.f32 0.125, %v86_v45 }
  0xdc   :  { %v88_v47 = vsub.f32 %v78_v38, %v87_v46 }
  0xde   :  { %v89_v48 = vmul.f32 %v88_v47, %v88_v47 }
  0xe0   :  { %v90_v49 = vsel %vm79_vm1, %v89_v48, 0.0 }
  0xe1   :  { %v91_v50 = vrot.slane %v90_v49, 4 }
  0xe3   :  { %v92_v51 = vadd.f32 %v91_v50, %v90_v49 }
  0xe5   :  { %v93_v52 = vrot.slane %v92_v51, 2 }
  0xe7   :  { %v94_v53 = vadd.f32 %v93_v52, %v92_v51 }
  0xe9   :  { %v95_v54 = vrot.slane %v94_v53, 1 }
  0xeb   :  { %v96_v55 = vadd.f32 %v95_v54, %v94_v53 }
  0xed   :  { %v97_v56 = vmul.f32 0.125, %v96_v55 }
  0xef   :  { %v98_v57 = vadd.f32 1e-05, %v97_v56 }
  0xf1   :  { %245 = vrsqrt.f32 %v98_v57 }
  0xfb   :  { %v246_v62 = vpop.eup %245 }
  0xfc   :  { %v100_v63 = vmul.f32 %v246_v62, %v66_v60 }
  0xfe   :  { %v101_v1 = vmul.f32 %v100_v63, %v87_v46  ;;  %v106_v2 = vrot.slane %v100_v63, %v105_v61 }
 0x100   :  { %v102_v3 = vsub.f32 %v67_v0, %v101_v1  ;;  %v107_v4 = vmul.f32 %v106_v2, %v78_v38 }
 0x102   :  { %v111_v5 = vrot.slane %v102_v3, %v105_v61 }
 0x104   :  { %v112_v6 = vadd.f32 %v111_v5, %v107_v4 }
 0x106   :  { %v113_v7 = vmul.f32 0.01, %v112_v6 }
 0x108   :  { %v114_v8 = vmax.f32 %v112_v6, %v113_v7 }
 0x10a   :  { %230 = vmatmul.mubr.msk.f32.vlgmr.msra.gmra.mrb[0].mxu0 %vm79_vm1, %v114_v8 }
 0x1dd   :  { %v196_v10 = vpop.f32.mrb[0].mxu0 }
 0x1de   :  { %v197_v11 = vadd.f32 %v218_v9, %v196_v10  ;;  %v231_v12 = vpop.f32.mrb[1].mxu0 }
 0x1e0   :  { %200 = vst.msk [vmem:[#allocation5] sm:$0xff] %vm79_vm1, %v197_v11 }
 0x1e1   :  { %270 = shalt.err (!%p267_p9)
}
 0x1e2   :  { %s271_s12 = scalar_lea.hbm %s362_s4, 128 }
 0x1e3   :  { %p272_p10 = scmp.ne.s32.totalorder %s362_s4, %s271_s12  ;;  %p275_p11 = scmp.lt.u32.totalorder %s271_s12, %s362_s4 }
 0x1e5   :  { %p277_p12 = pnand %p275_p11, %p272_p10 }
 0x1e7   :  { %280 = shalt.err (!%p277_p12)
}
 0x1e8   :  { %210 = dma.vmem_to_hbm [thread:$0]  %s208_s8, 128, %s362_s4, [#allocation3]  }
 0x1e9   :  { %283 = dma.done.wait [#allocation3], 128  }
 0x1ea   :  { %284 = vsyncadd [#allocation3], 4294967168 }
 0x1eb   :  { %214 = vsyncpa [#allocation3], 1 }
 0x1ec   :  { %215 = vsyncpa [#allocation4], 1 }

</bundles_post_ra>
